<compile_context>
chip_gen: v5e
topology: v5e:2x2
jax: 0.10.0
libtpu: 0.0.40
codegen_flags: <defaults>
</compile_context>

<pallas_src>
import functools

import jax
import jax.numpy as jnp
from jax.experimental import pallas as pl
from jax.experimental.pallas import tpu as pltpu

_LANES = 128
_MAX_BLOCK_ROWS = 4096  # 4096 x 128 x 4B = 2 MiB/tile; dbl-buffered in+out = 8 MiB


def _round_up(x, m):
    return ((x + m - 1) // m) * m


def _sublane_multiple(dtype):
    itemsize = jnp.dtype(dtype).itemsize
    return {4: 8, 2: 16, 1: 32}.get(itemsize, 8)


def _compute_dtype(dtype):
    # bf16 VPU/EUP exists on v6e/v7x; force f32 compute elsewhere (incl. v5e).
    if dtype == jnp.bfloat16:
        try:
            kind = jax.devices()[0].device_kind.lower()
        except Exception:
            kind = ""
        if ("v6" in kind) or ("v7" in kind):
            return jnp.bfloat16
    return jnp.float32


def _mlp4_kernel(w_ref, b_ref, x_ref, o_ref, *, compute_dtype):
    # w_ref, b_ref: (1, 1) f32 SMEM scalars; x_ref/o_ref: (tr, 128) VMEM tiles.
    w = w_ref[0, 0].astype(compute_dtype)
    b = b_ref[0, 0].astype(compute_dtype)
    z = x_ref[...].astype(compute_dtype) * w + b          # Linear(1,1): x @ W.T + b
    # sigmoid(z) == 0.5*tanh(0.5*z) + 0.5 : one EUP transcendental, no divide.
    y = 0.5 * jnp.tanh(0.5 * z) + 0.5
    o_ref[...] = y.astype(o_ref.dtype)                    # native-dtype store


def mlp4_forward(x, w, b):
    """x: (..., 1) array; w: (1, 1); b: (1,). Returns (N, 1) in x.dtype."""
    n = x.size  # Linear(1,1) is elementwise over the flattened input
    dtype = x.dtype
    itemsize = jnp.dtype(dtype).itemsize
    sub = _sublane_multiple(dtype)
    cd = _compute_dtype(dtype)

    # ---- lane-dense reshape: flatten -> pad to 128-lane boundary -> (rows, 128)
    rows = pl.cdiv(n, _LANES)
    padded_n = rows * _LANES

    flat = x.reshape(-1)
    if padded_n != n:
        # Only pad up to the next 128-lane boundary (tiny; skipped when
        # n % 128 == 0). The ragged last sublane-block is left to Pallas.
        flat = jnp.pad(flat, (0, padded_n - n))
    x2d = flat.reshape(rows, _LANES)

    # ---- tile selection ----
    if rows <= sub:
        tr = rows  # tiny input: single block == full array (exact-dims rule)
    else:
        # >= 2 grid steps so both v7x TensorCores get work; cap the tile size.
        tr = min(_MAX_BLOCK_ROWS, _round_up(pl.cdiv(rows, 2), sub))
    grid = (pl.cdiv(rows, tr),)

    w2 = w.reshape(1, 1).astype(jnp.float32)
    b2 = b.reshape(1, 1).astype(jnp.float32)

    out2d = pl.pallas_call(
        functools.partial(_mlp4_kernel, compute_dtype=cd),
        out_shape=jax.ShapeDtypeStruct((rows, _LANES), dtype),
        grid_spec=pltpu.PrefetchScalarGridSpec(
            num_scalar_prefetch=0,
            grid=grid,
            in_specs=[
                pl.BlockSpec(memory_space=pltpu.MemorySpace.SMEM),  # w (1,1)
                pl.BlockSpec(memory_space=pltpu.MemorySpace.SMEM),  # b (1,1)
                pl.BlockSpec((tr, _LANES), lambda i: (i, 0)),       # x tile
            ],
            out_specs=pl.BlockSpec((tr, _LANES), lambda i: (i, 0)),
        ),
        compiler_params=pltpu.CompilerParams(
            dimension_semantics=("parallel",),
        ),
        cost_estimate=pl.CostEstimate(
            flops=2 * padded_n,
            transcendentals=padded_n,
            bytes_accessed=2 * padded_n * itemsize,
        ),
    )(w2, b2, x2d)

    # x.view(-1, 1); strip lane padding only if it was added.
    if padded_n != n:
        return out2d.reshape(-1)[:n].reshape(-1, 1)
    return out2d.reshape(-1, 1)


if __name__ == "__main__":
    key = jax.random.PRNGKey(0)
    kx, kw, kb, kx2 = jax.random.split(key, 4)

    # Small deterministic shapes consistent with the module: (batch, in_features=1).
    x = jax.random.normal(kx, (8, 1), dtype=jnp.float32)
    # Deterministic Linear(1, 1) parameter init (PyTorch-like uniform bound 1/sqrt(1)).
    w = jax.random.uniform(kw, (1, 1), minval=-1.0, maxval=1.0, dtype=jnp.float32)
    b = jax.random.uniform(kb, (1,), minval=-1.0, maxval=1.0, dtype=jnp.float32)

    y = mlp4_forward(x, w, b)
    jax.block_until_ready(y)
    y_ref = jax.nn.sigmoid(x @ w.T + b).reshape(-1, 1)
    assert y.shape == (8, 1)
    assert jnp.allclose(y, y_ref, atol=1e-6, rtol=1e-6)

    # Second check: exercises the multi-block grid + ragged-last-block path.
    x2 = jax.random.normal(kx2, (2500, 1), dtype=jnp.float32)
    y2 = mlp4_forward(x2, w, b)
    jax.block_until_ready(y2)
    y2_ref = jax.nn.sigmoid(x2 @ w.T + b).reshape(-1, 1)
    assert y2.shape == (2500, 1)
    assert jnp.allclose(y2, y2_ref, atol=1e-6, rtol=1e-6)

    print("KERNEL_OK")
</pallas_src>

<mosaic_0001>
module attributes {stable_mosaic.version = 11 : i64} {
  func.func @_mlp4_kernel(%arg0: i32, %arg1: memref<1x1xf32, #tpu.memory_space<smem>>, %arg2: memref<1x1xf32, #tpu.memory_space<smem>>, %arg3: memref<1x128xf32, #tpu.memory_space<vmem>>, %arg4: memref<1x128xf32, #tpu.memory_space<vmem>>) attributes {dimension_semantics = [#tpu.dimension_semantics<parallel>], iteration_bounds = array<i64: 1>, scalar_prefetch = 0 : i64, scratch_operands = 0 : i64, tpu.core_type = #tpu.core_type<tc>, window_params = [{transform_indices = @transform_0, window_bounds = array<i64: 1, 1>}, {transform_indices = @transform_1, window_bounds = array<i64: 1, 1>}, {transform_indices = @transform_2, window_bounds = array<i64: 1, 128>}, {transform_indices = @transform_3, window_bounds = array<i64: 1, 128>}]} {
    %c0 = arith.constant 0 : index
    %c0_0 = arith.constant 0 : index
    %0 = memref.load %arg1[%c0, %c0_0] : memref<1x1xf32, #tpu.memory_space<smem>>
    %c0_1 = arith.constant 0 : index
    %c0_2 = arith.constant 0 : index
    %1 = memref.load %arg2[%c0_1, %c0_2] : memref<1x1xf32, #tpu.memory_space<smem>>
    %c0_3 = arith.constant 0 : index
    %c0_4 = arith.constant 0 : index
    %2 = vector.load %arg3[%c0_3, %c0_4] : memref<1x128xf32, #tpu.memory_space<vmem>>, vector<1x128xf32>
    %3 = vector.broadcast %0 : f32 to vector<1x128xf32>
    %4 = arith.mulf %2, %3 : vector<1x128xf32>
    %5 = vector.broadcast %1 : f32 to vector<1x128xf32>
    %6 = arith.addf %4, %5 : vector<1x128xf32>
    %cst = arith.constant 5.000000e-01 : f32
    %7 = vector.broadcast %cst : f32 to vector<1x128xf32>
    %8 = arith.mulf %7, %6 : vector<1x128xf32>
    %9 = math.tanh %8 : vector<1x128xf32>
    %cst_5 = arith.constant 5.000000e-01 : f32
    %10 = vector.broadcast %cst_5 : f32 to vector<1x128xf32>
    %11 = arith.mulf %10, %9 : vector<1x128xf32>
    %cst_6 = arith.constant 5.000000e-01 : f32
    %12 = vector.broadcast %cst_6 : f32 to vector<1x128xf32>
    %13 = arith.addf %11, %12 : vector<1x128xf32>
    %c0_7 = arith.constant 0 : index
    %c0_8 = arith.constant 0 : index
    %14 = vector.load %arg4[%c0_7, %c0_8] : memref<1x128xf32, #tpu.memory_space<vmem>>, vector<1x128xf32>
    tpu.vector_store %arg4[%c0_7, %c0_8], %13 {strides = array<i32>} : memref<1x128xf32, #tpu.memory_space<vmem>>, vector<1x128xf32>,
    return
  }
  func.func @transform_0(%arg0: i32) -> (i32, i32) {
    %c0_i32 = arith.constant 0 : i32
    %c0_i32_0 = arith.constant 0 : i32
    %c0_i32_1 = arith.constant 0 : i32
    return %c0_i32, %c0_i32_0 : i32, i32
  }
  func.func @transform_1(%arg0: i32) -> (i32, i32) {
    %c0_i32 = arith.constant 0 : i32
    %c0_i32_0 = arith.constant 0 : i32
    %c0_i32_1 = arith.constant 0 : i32
    return %c0_i32, %c0_i32_0 : i32, i32
  }
  func.func @transform_2(%arg0: i32) -> (i32, i32) {
    %c0_i32 = arith.constant 0 : i32
    %c0_i32_0 = arith.constant 0 : i32
    return %arg0, %c0_i32 : i32, i32
  }
  func.func @transform_3(%arg0: i32) -> (i32, i32) {
    %c0_i32 = arith.constant 0 : i32
    %c0_i32_0 = arith.constant 0 : i32
    return %arg0, %c0_i32 : i32, i32
  }
}

</mosaic_0001>

<bundles_post_ra>
// kernel: tpu_custom_call.1
= control target key start
LH: loop header
LB: loop body
LE: loop exit
PB: predicated region body
PF: predicated region fallthrough
CT: control target
= control target key end

     0   :  { %s107_s0 = inlined_call_operand.<no memory space> [shape: f32[1,1], index: 0, kind: input, shape index: {}]   ;;  %s108_s1 = inlined_call_operand.<no memory space> [shape: f32[1,1], index: 1, kind: input, shape index: {}]   ;;  %s109_s2 = inlined_call_operand.vmem [shape: f32[1,128], index: 2, kind: input, shape index: {}]   ;;  %s110_s3 = inlined_call_operand.hbm [shape: f32[1,128], index: 3, kind: output, shape index: {}]  }
   0x1   :  { %v19_v0 = vld [vmem:[%s109_s2] sm:$0x1]  ;;  %v20_v1 = vstv %s107_s0  ;;  %v22_v2 = vstv %s108_s1 }
   0x2   :  { %10 = vsyncpa [#allocation5], 0  ;;  %v21_v3 = vmul.f32 %v20_v1, %v19_v0  ;;  %s74_s18 = smov [#allocation4]   ;;  %s36_s2 = sshll.u32 %s110_s3, 4  ;;  %s37_s2 = int_to_ptr.hbm [resolvable:$true] %s36_s2 }
   0x3   :  { %s34_s19 = sshll.u32 %s74_s18, 4  ;;  %s35_s19 = int_to_ptr.vmem [resolvable:$true] %s34_s19 }
   0x4   :  { %v23_v4 = vadd.f32 %v22_v2, %v21_v3 }
   0x6   :  { %v24_v5 = vmul.f32 0.5, %v23_v4 }
   0x8   :  { %46 = vtanh.f32 %v24_v5 }
   0xe   :  { %v47_v6 = vpop.eup %46 }
   0xf   :  { %v26_v7 = vmul.f32 0.5, %v47_v6 }
  0x11   :  { %v27_v8 = vadd.f32 0.5, %v26_v7 }
  0x13   :  { %28 = vst [vmem:[#allocation4] sm:$0x1] %v27_v8 }
  0x14   :  { %39 = dma.vmem_to_hbm [thread:$0]  %s35_s19, 16, %s37_s2, [#allocation5]  }
  0x15   :  { %72 = dma.done.wait [#allocation5], 16  }
  0x16   :  { %73 = vsyncadd [#allocation5], 4294967280 }
  0x17   :  { %44 = vsyncpa [#allocation5], 1 }

</bundles_post_ra>
